<compile_context>
chip_gen: v5e
topology: v5e:2x2
jax: 0.10.0
libtpu: 0.0.40
codegen_flags: <defaults>
</compile_context>

<pallas_src>
import jax
import jax.numpy as jnp
from jax.experimental import pallas as pl
from jax.experimental.pallas import tpu as pltpu

EPS = 1e-5          # nn.InstanceNorm3d default eps
NEG_SLOPE = 0.01    # nn.LeakyReLU default negative_slope

# Generation-portable budgets:
#   * requested scoped VMEM must be valid on v7x (64 MiB physical/TC) and is
#     raised above v5e's small default -> request 32 MiB explicitly.
#   * per-grid-step working set (double-buffered blocks + f32 temps) is kept
#     under ~20 MiB so the 32 MiB request always suffices.
VMEM_LIMIT_BYTES = 32 * 1024 * 1024
WORKSET_BUDGET_BYTES = 20 * 1024 * 1024


def _pick_divisor(n, unit, cap):
    """Largest divisor of n that is a multiple of `unit` and <= cap.

    Falls back to n itself (full-extent block) when no such divisor exists;
    that stays correct, just not lane/sublane aligned (masked partial stores).
    """
    cap = max(unit, min(cap, n))
    t = (cap // unit) * unit
    while t >= unit:
        if n % t == 0:
            return t
        t -= unit
    return n


# ---------------------------------------------------------------------------
# Kernel A (stride == 1, per-sample block fits VMEM):
#   fused global-avg-pool + FC + ReLU + FC + sigmoid + scale.  x is read once.
#   The FCs are ~1e2 MACs — a separate kernel launch would cost more than the
#   math, so they run in-kernel as tiny column matmuls.
# ---------------------------------------------------------------------------
def se_fused_kernel(x_ref, w1_ref, b1_ref, w2_ref, b2_ref, o_ref):
    xf = x_ref[0].astype(jnp.float32)                               # (C, S) f32
    pooled = jnp.mean(xf, axis=-1, keepdims=True)                   # (C, 1)
    h = jnp.dot(w1_ref[...], pooled,
                preferred_element_type=jnp.float32) + b1_ref[...]   # (Cr, 1)
    h = jnp.maximum(h, 0.0)
    s = jnp.dot(w2_ref[...], h,
                preferred_element_type=jnp.float32) + b2_ref[...]   # (C, 1)
    sew = jax.nn.sigmoid(s)                                         # (C, 1)
    o_ref[0] = (xf * sew).astype(o_ref.dtype)


# ---------------------------------------------------------------------------
# Kernel B (stride == 1 fallback): pure streaming scale over (N*C, S) tiles.
#   se_w is precomputed (XLA pool + jnp FCs); tiles are lane-dense and sized
#   from the working-set budget; rows fold N*C onto the sublane axis.
# ---------------------------------------------------------------------------
def se_scale_kernel(x_ref, sew_ref, o_ref):
    xf = x_ref[...].astype(jnp.float32)                   # (RT, TS)
    o_ref[...] = (xf * sew_ref[...]).astype(o_ref.dtype)  # sew block: (RT, 1)


# ---------------------------------------------------------------------------
# Shared FactorizedReduce tile math: LeakyReLU + the two 1x1x1 stride-2 convs
# as two half-dots with f32 accumulation.  Operands stay in the activation
# dtype (bf16 activations -> native bf16 MXU path); everything downstream of
# the dot (stats, norm, scale) is f32 (v5e-safe).
# ---------------------------------------------------------------------------
def _fr_halves(xa_ref, xb_ref, w1_ref, w2_ref):
    xa = xa_ref[0]
    xb = xb_ref[0]
    xa = jnp.where(xa > 0, xa, xa * NEG_SLOPE)
    xb = jnp.where(xb > 0, xb, xb * NEG_SLOPE)
    y1 = jnp.dot(w1_ref[...], xa, preferred_element_type=jnp.float32)  # (C/2, TS2)
    y2 = jnp.dot(w2_ref[...], xb, preferred_element_type=jnp.float32)  # (C/2, TS2)
    return y1, y2


# ---------------------------------------------------------------------------
# Kernel C (stride > 1, whole S2 fits VMEM): FactorizedReduce + InstanceNorm3d
# + SE scale in one grid step per sample, with exact centered two-pass stats
# (no E[y^2]-mu^2 cancellation).
# ---------------------------------------------------------------------------
def se_fr_single_kernel(xa_ref, xb_ref, w1_ref, w2_ref, sew_ref, o_ref):
    y1, y2 = _fr_halves(xa_ref, xb_ref, w1_ref, w2_ref)
    half = y1.shape[0]
    sew = sew_ref[0]                                                # (C, 1) f32

    def _norm(y, sw):
        mu = jnp.mean(y, axis=-1, keepdims=True)
        var = jnp.mean((y - mu) ** 2, axis=-1, keepdims=True)       # centered
        return (y - mu) * (jax.lax.rsqrt(var + EPS) * sw)

    o_ref[0, :half] = _norm(y1, sew[:half]).astype(o_ref.dtype)
    o_ref[0, half:] = _norm(y2, sew[half:]).astype(o_ref.dtype)


# ---------------------------------------------------------------------------
# Kernel D (stride > 1, S2 tiled): two-phase over grid (N, 2, S2 // TS2).
#   phase 0: accumulate per-channel sum / sum-of-squares into VMEM scratch and
#            finalize (shift, scale) at the last tile;
#   phase 1: recompute the tile, normalize, SE-scale, lane-dense store.
# Inputs are streamed twice but VMEM stays bounded and the pipeline always has
# work.  The output index_map keeps phase-0 steps on block 0, so no garbage
# block is ever written back to HBM.
# ---------------------------------------------------------------------------
def make_se_fr_tiled_kernel(s2_total, half):
    inv_s2 = 1.0 / float(s2_total)

    def kernel(xa_ref, xb_ref, w1_ref, w2_ref, sew_ref, o_ref,
               sum_shift_ref, sq_scale_ref):
        p = pl.program_id(1)
        t = pl.program_id(2)
        nt = pl.num_programs(2)

        y1, y2 = _fr_halves(xa_ref, xb_ref, w1_ref, w2_ref)

        @pl.when((p == 0) & (t == 0))
        def _():
            sum_shift_ref[...] = jnp.zeros_like(sum_shift_ref)
            sq_scale_ref[...] = jnp.zeros_like(sq_scale_ref)

        @pl.when(p == 0)
        def _():
            sum_shift_ref[:half] += jnp.sum(y1, axis=-1, keepdims=True)
            sum_shift_ref[half:] += jnp.sum(y2, axis=-1, keepdims=True)
            sq_scale_ref[:half] += jnp.sum(y1 * y1, axis=-1, keepdims=True)
            sq_scale_ref[half:] += jnp.sum(y2 * y2, axis=-1, keepdims=True)

        @pl.when((p == 0) & (t == nt - 1))
        def _():
            mu = sum_shift_ref[...] * inv_s2
            # One-pass E[y^2]-mu^2 (clamped at 0).  A fully centered two-pass
            # would need a third phase over the inputs; the centered form is
            # used in se_fr_single_kernel whenever the block fits VMEM.
            var = jnp.maximum(sq_scale_ref[...] * inv_s2 - mu * mu, 0.0)
            scale = jax.lax.rsqrt(var + EPS) * sew_ref[0]           # (C, 1)
            sum_shift_ref[...] = -mu * scale                        # shift
            sq_scale_ref[...] = scale                               # scale

        @pl.when(p == 1)
        def _():
            o_ref[0, :half] = (y1 * sq_scale_ref[:half]
                               + sum_shift_ref[:half]).astype(o_ref.dtype)
            o_ref[0, half:] = (y2 * sq_scale_ref[half:]
                               + sum_shift_ref[half:]).astype(o_ref.dtype)

    return kernel


# ---------------------------------------------------------------------------
# Wrapper
# ---------------------------------------------------------------------------
def _se_weight_jnp(pooled, w1, b1, w2, b2):
    """Tiny SE FC path in plain jnp (a dedicated kernel is pure launch cost)."""
    h = jnp.maximum(pooled @ w1.T + b1, 0.0)
    return jax.nn.sigmoid(h @ w2.T + b2)


def se_block_forward(x, params, stride, *,
                     workset_budget_bytes=WORKSET_BUDGET_BYTES):
    """x: (N, C, D, H, W), f32 or bf16. Returns NCDHW (spatial halved if stride>1)."""
    N, C, D, H, W = x.shape
    S = D * H * W
    dt = x.dtype
    isize = jnp.dtype(dt).itemsize
    x_flat = x.reshape(N, C, S)

    w1 = params["w1"].astype(jnp.float32)      # (Cr, C)
    b1 = params["b1"].astype(jnp.float32)      # (Cr,)
    w2 = params["w2"].astype(jnp.float32)      # (C, Cr)
    b2 = params["b2"].astype(jnp.float32)      # (C,)
    Cr = w1.shape[0]

    if stride == 1:
        # Fused-kernel per-sample working set: x block + out block (both
        # double-buffered) + the in-kernel f32 upcast temp.
        fused_bytes = C * S * (2 * isize + 2 * isize + 8)
        if fused_bytes <= workset_budget_bytes:
            out = pl.pallas_call(
                se_fused_kernel,
                out_shape=jax.ShapeDtypeStruct((N, C, S), dt),
                grid_spec=pltpu.PrefetchScalarGridSpec(
                    num_scalar_prefetch=0,
                    grid=(N,),
                    in_specs=[
                        pl.BlockSpec((1, C, S), lambda n: (n, 0, 0)),
                        pl.BlockSpec((Cr, C), lambda n: (0, 0)),
                        pl.BlockSpec((Cr, 1), lambda n: (0, 0)),
                        pl.BlockSpec((C, Cr), lambda n: (0, 0)),
                        pl.BlockSpec((C, 1), lambda n: (0, 0)),
                    ],
                    out_specs=pl.BlockSpec((1, C, S), lambda n: (n, 0, 0)),
                ),
                compiler_params=pltpu.CompilerParams(
                    dimension_semantics=("parallel",),
                    vmem_limit_bytes=VMEM_LIMIT_BYTES),
            )(x_flat, w1, b1.reshape(Cr, 1), w2, b2.reshape(C, 1))
            return out.reshape(N, C, D, H, W)

        # Fallback (per-sample block too large): XLA pool + jnp FCs, then a
        # lane-dense tiled streaming scale over (N*C, S).
        pooled = jnp.mean(x_flat.astype(jnp.float32), axis=-1)           # (N, C)
        se_w = _se_weight_jnp(pooled, w1, b1, w2, b2).reshape(N * C, 1)  # f32
        x2 = x_flat.reshape(N * C, S)

        per_row_elem = 2 * isize + 2 * isize + 4    # dbl-buffered in+out + f32 tmp
        RT = _pick_divisor(N * C, 8, 512)
        TS = _pick_divisor(
            S, 128, max(128, workset_budget_bytes // (per_row_elem * RT)))
        out = pl.pallas_call(
            se_scale_kernel,
            out_shape=jax.ShapeDtypeStruct((N * C, S), dt),
            grid_spec=pltpu.PrefetchScalarGridSpec(
                num_scalar_prefetch=0,
                grid=(N * C // RT, S // TS),
                in_specs=[
                    pl.BlockSpec((RT, TS), lambda r, s: (r, s)),
                    pl.BlockSpec((RT, 1), lambda r, s: (r, 0)),
                ],
                out_specs=pl.BlockSpec((RT, TS), lambda r, s: (r, s)),
            ),
            compiler_params=pltpu.CompilerParams(
                dimension_semantics=("parallel", "parallel"),
                vmem_limit_bytes=VMEM_LIMIT_BYTES),
        )(x2, se_w)
        return out.reshape(N, C, D, H, W)

    # ---- stride > 1: FactorizedReduce + InstanceNorm3d + SE scale ----------
    assert C % 2 == 0, "FactorizedReduce requires an even channel count"
    assert D % 2 == 0 and H % 2 == 0 and W % 2 == 0
    S2 = (D // 2) * (H // 2) * (W // 2)
    half = C // 2

    # SE squeeze uses the ORIGINAL x (module semantics).  The pool must read
    # all of x anyway (the FR convs only touch 1/4 of it), so it stays a fused
    # XLA reduce + tiny jnp FCs; se_w rides into the FR kernel as (N, C, 1).
    pooled = jnp.mean(x_flat.astype(jnp.float32), axis=-1)
    se_w = _se_weight_jnp(pooled, w1, b1, w2, b2).reshape(N, C, 1)

    # Even / odd strided views of x, kept as two SEPARATE (N, C, S2) inputs:
    # no (N, 2C, S2) concat copy in HBM, no block-diagonal zero MACs.
    xr = x.reshape(N, C, D // 2, 2, H // 2, 2, W // 2, 2)
    xa = xr[:, :, :, 0, :, 0, :, 0].reshape(N, C, S2)   # x[:, :,  ::2,  ::2,  ::2]
    xb = xr[:, :, :, 1, :, 1, :, 1].reshape(N, C, S2)   # x[:, :, 1::2, 1::2, 1::2]

    cw1 = params["cw1"].astype(dt)                      # MXU operands kept in
    cw2 = params["cw2"].astype(dt)                      # the activation dtype

    # Per-step bytes per lane of S2: xa+xb (dbl-buffered) + out (dbl-buffered)
    # + f32 y1/y2 temps.
    per_lane = C * (4 * isize + 2 * isize + 12)
    TS2 = _pick_divisor(S2, 128, max(128, workset_budget_bytes // per_lane))

    if TS2 >= S2:
        out = pl.pallas_call(
            se_fr_single_kernel,
            out_shape=jax.ShapeDtypeStruct((N, C, S2), dt),
            grid_spec=pltpu.PrefetchScalarGridSpec(
                num_scalar_prefetch=0,
                grid=(N,),
                in_specs=[
                    pl.BlockSpec((1, C, S2), lambda n: (n, 0, 0)),
                    pl.BlockSpec((1, C, S2), lambda n: (n, 0, 0)),
                    pl.BlockSpec((half, C), lambda n: (0, 0)),
                    pl.BlockSpec((half, C), lambda n: (0, 0)),
                    pl.BlockSpec((1, C, 1), lambda n: (n, 0, 0)),
                ],
                out_specs=pl.BlockSpec((1, C, S2), lambda n: (n, 0, 0)),
            ),
            compiler_params=pltpu.CompilerParams(
                dimension_semantics=("parallel",),
                vmem_limit_bytes=VMEM_LIMIT_BYTES),
        )(xa, xb, cw1, cw2, se_w)
    else:
        nt = S2 // TS2
        out = pl.pallas_call(
            make_se_fr_tiled_kernel(S2, half),
            out_shape=jax.ShapeDtypeStruct((N, C, S2), dt),
            grid_spec=pltpu.PrefetchScalarGridSpec(
                num_scalar_prefetch=0,
                grid=(N, 2, nt),
                in_specs=[
                    pl.BlockSpec((1, C, TS2), lambda n, p, t: (n, 0, t)),
                    pl.BlockSpec((1, C, TS2), lambda n, p, t: (n, 0, t)),
                    pl.BlockSpec((half, C), lambda n, p, t: (0, 0)),
                    pl.BlockSpec((half, C), lambda n, p, t: (0, 0)),
                    pl.BlockSpec((1, C, 1), lambda n, p, t: (n, 0, 0)),
                ],
                # Phase 0 (p == 0) pins the output on block (n, 0, 0) so the
                # never-written buffer is not flushed to HBM; only fully
                # written phase-1 tiles reach memory.
                out_specs=pl.BlockSpec((1, C, TS2),
                                       lambda n, p, t: (n, 0, t * p)),
                scratch_shapes=[pltpu.VMEM((C, 1), jnp.float32),
                                pltpu.VMEM((C, 1), jnp.float32)],
            ),
            compiler_params=pltpu.CompilerParams(
                dimension_semantics=("parallel", "arbitrary", "arbitrary"),
                vmem_limit_bytes=VMEM_LIMIT_BYTES),
        )(xa, xb, cw1, cw2, se_w)
    return out.reshape(N, C, D // 2, H // 2, W // 2)


# ---------------------------------------------------------------------------
# Pure-JAX reference (mirrors the PyTorch forward) for a correctness check.
# ---------------------------------------------------------------------------
def se_block_reference(x, params, stride):
    N, C = x.shape[:2]
    pooled = x.reshape(N, C, -1).mean(-1)
    h = jnp.maximum(pooled @ params["w1"].T + params["b1"], 0.0)
    se_w = jax.nn.sigmoid(h @ params["w2"].T + params["b2"])
    se_w = se_w[:, :, None, None, None]
    if stride > 1:
        xr = jnp.where(x > 0, x, NEG_SLOPE * x)
        xa = xr[:, :, ::2, ::2, ::2]
        xb = xr[:, :, 1:, 1:, 1:][:, :, ::2, ::2, ::2]
        y1 = jnp.einsum("kc,ncdhw->nkdhw", params["cw1"], xa)
        y2 = jnp.einsum("kc,ncdhw->nkdhw", params["cw2"], xb)
        y = jnp.concatenate([y1, y2], axis=1)
        flat = y.reshape(N, C, -1)
        mu = flat.mean(-1)[:, :, None, None, None]
        var = ((flat - flat.mean(-1, keepdims=True)) ** 2).mean(-1)[:, :, None, None, None]
        x = (y - mu) / jnp.sqrt(var + EPS)
    return x * se_w


if __name__ == "__main__":
    key = jax.random.PRNGKey(0)
    k = jax.random.split(key, 8)

    # SEBlock(in_ch=16, r=2, stride) on a (2, 16, 16, 16, 16) NCDHW input.
    # S = 4096, S2 = 512 -> lane-dense (multiple-of-128) tiles everywhere.
    N, C, r = 2, 16, 2
    D = H = W = 16
    Cr = C // r
    x = jax.random.normal(k[0], (N, C, D, H, W), dtype=jnp.float32)

    params = {
        "w1": 0.2 * jax.random.normal(k[1], (Cr, C), dtype=jnp.float32),       # Linear(C, C//r)
        "b1": 0.1 * jax.random.normal(k[2], (Cr,), dtype=jnp.float32),
        "w2": 0.2 * jax.random.normal(k[3], (C, Cr), dtype=jnp.float32),       # Linear(C//r, C)
        "b2": 0.1 * jax.random.normal(k[4], (C,), dtype=jnp.float32),
        "cw1": 0.2 * jax.random.normal(k[5], (C // 2, C), dtype=jnp.float32),  # Conv3d 1x1x1 s2
        "cw2": 0.2 * jax.random.normal(k[6], (C // 2, C), dtype=jnp.float32),  # Conv3d 1x1x1 s2
    }

    # A tiny working-set budget forces the fallback / tiled two-phase kernels,
    # so all four kernel variants compile and are checked.
    TINY_BUDGET = 64 * 1024

    x_bf16 = x.astype(jnp.bfloat16)
    cases = [
        (x, 1e-4, None),            # f32: fused (stride 1) + single-pass FR
        (x, 1e-4, TINY_BUDGET),     # f32: tiled scale + two-phase FR
        (x_bf16, 3e-2, None),       # bf16 I/O, bf16 MXU operands, f32 math
        (x_bf16, 3e-2, TINY_BUDGET),
    ]

    ok = True
    for xin, tol, budget in cases:
        kwargs = {} if budget is None else {"workset_budget_bytes": budget}
        ref_in = xin.astype(jnp.float32)
        for stride in (1, 2):
            out = jax.block_until_ready(
                se_block_forward(xin, params, stride, **kwargs))
            ref = se_block_reference(ref_in, params, stride)
            ok &= bool(jnp.allclose(out.astype(jnp.float32), ref,
                                    rtol=tol, atol=tol))

    print("KERNEL_OK" if ok else "MISMATCH")
</pallas_src>

<mosaic_0001>
module attributes {stable_mosaic.version = 11 : i64} {
  func.func @se_fused_kernel(%arg0: i32, %arg1: memref<1x16x4096xf32, #tpu.memory_space<vmem>>, %arg2: memref<8x16xf32, #tpu.memory_space<vmem>>, %arg3: memref<8x1xf32, #tpu.memory_space<vmem>>, %arg4: memref<16x8xf32, #tpu.memory_space<vmem>>, %arg5: memref<16x1xf32, #tpu.memory_space<vmem>>, %arg6: memref<1x16x4096xf32, #tpu.memory_space<vmem>>) attributes {dimension_semantics = [#tpu.dimension_semantics<parallel>], iteration_bounds = array<i64: 2>, scalar_prefetch = 0 : i64, scratch_operands = 0 : i64, tpu.core_type = #tpu.core_type<tc>, window_params = [{transform_indices = @transform_0, window_bounds = array<i64: 1, 16, 4096>}, {pipeline_mode = #tpu.pipeline_mode<synchronous>, transform_indices = @transform_1, window_bounds = array<i64: 8, 16>}, {pipeline_mode = #tpu.pipeline_mode<synchronous>, transform_indices = @transform_2, window_bounds = array<i64: 8, 1>}, {pipeline_mode = #tpu.pipeline_mode<synchronous>, transform_indices = @transform_3, window_bounds = array<i64: 16, 8>}, {pipeline_mode = #tpu.pipeline_mode<synchronous>, transform_indices = @transform_4, window_bounds = array<i64: 16, 1>}, {transform_indices = @transform_5, window_bounds = array<i64: 1, 16, 4096>}]} {
    %c0 = arith.constant 0 : index
    %c0_0 = arith.constant 0 : index
    %c0_1 = arith.constant 0 : index
    %0 = vector.load %arg1[%c0, %c0_0, %c0_1] : memref<1x16x4096xf32, #tpu.memory_space<vmem>>, vector<1x16x4096xf32>
    %1 = vector.shape_cast %0 : vector<1x16x4096xf32> to vector<16x4096xf32>
    %cst = arith.constant dense<0.000000e+00> : vector<16xf32>
    %2 = vector.multi_reduction <add>, %1, %cst [1] : vector<16x4096xf32> to vector<16xf32>
    %3 = vector.shape_cast %2 : vector<16xf32> to vector<16x1xf32>
    %cst_2 = arith.constant 4.096000e+03 : f32
    %4 = vector.broadcast %cst_2 : f32 to vector<16x1xf32>
    %5 = arith.divf %3, %4 : vector<16x1xf32>
    %c0_3 = arith.constant 0 : index
    %c0_4 = arith.constant 0 : index
    %6 = vector.load %arg2[%c0_3, %c0_4] : memref<8x16xf32, #tpu.memory_space<vmem>>, vector<8x16xf32>
    %cst_5 = arith.constant dense<0.000000e+00> : vector<8x1xf32>
    %7 = tpu.matmul %6, %5, %cst_5 {dimension_numbers = #tpu.dot_dimension_numbers<[1], [0], [0], [1], [0, 0, 1, 1], [], []>} : vector<8x16xf32>, vector<16x1xf32>, vector<8x1xf32> -> vector<8x1xf32>
    %c0_6 = arith.constant 0 : index
    %c0_7 = arith.constant 0 : index
    %8 = vector.load %arg3[%c0_6, %c0_7] : memref<8x1xf32, #tpu.memory_space<vmem>>, vector<8x1xf32>
    %9 = arith.addf %7, %8 : vector<8x1xf32>
    %cst_8 = arith.constant 0.000000e+00 : f32
    %10 = vector.broadcast %cst_8 : f32 to vector<8x1xf32>
    %11 = arith.maximumf %9, %10 : vector<8x1xf32>
    %c0_9 = arith.constant 0 : index
    %c0_10 = arith.constant 0 : index
    %12 = vector.load %arg4[%c0_9, %c0_10] : memref<16x8xf32, #tpu.memory_space<vmem>>, vector<16x8xf32>
    %cst_11 = arith.constant dense<0.000000e+00> : vector<16x1xf32>
    %13 = tpu.matmul %12, %11, %cst_11 {dimension_numbers = #tpu.dot_dimension_numbers<[1], [0], [0], [1], [0, 0, 1, 1], [], []>} : vector<16x8xf32>, vector<8x1xf32>, vector<16x1xf32> -> vector<16x1xf32>
    %c0_12 = arith.constant 0 : index
    %c0_13 = arith.constant 0 : index
    %14 = vector.load %arg5[%c0_12, %c0_13] : memref<16x1xf32, #tpu.memory_space<vmem>>, vector<16x1xf32>
    %15 = arith.addf %13, %14 : vector<16x1xf32>
    %16 = arith.negf %15 : vector<16x1xf32>
    %17 = math.exp %16 : vector<16x1xf32>
    %cst_14 = arith.constant 1.000000e+00 : f32
    %18 = vector.broadcast %cst_14 : f32 to vector<16x1xf32>
    %19 = arith.addf %18, %17 : vector<16x1xf32>
    %20 = arith.divf %18, %19 : vector<16x1xf32>
    %21 = vector.broadcast %20 : vector<16x1xf32> to vector<16x4096xf32>
    %22 = arith.mulf %1, %21 : vector<16x4096xf32>
    %c0_15 = arith.constant 0 : index
    %c0_16 = arith.constant 0 : index
    %c0_17 = arith.constant 0 : index
    %23 = vector.load %arg6[%c0_15, %c0_16, %c0_17] : memref<1x16x4096xf32, #tpu.memory_space<vmem>>, vector<1x16x4096xf32>
    %24 = vector.shape_cast %23 : vector<1x16x4096xf32> to vector<16x4096xf32>
    %25 = vector.shape_cast %22 : vector<16x4096xf32> to vector<1x16x4096xf32>
    tpu.vector_store %arg6[%c0_15, %c0_16, %c0_17], %25 {strides = array<i32>} : memref<1x16x4096xf32, #tpu.memory_space<vmem>>, vector<1x16x4096xf32>,
    return
  }
  func.func @transform_0(%arg0: i32) -> (i32, i32, i32) {
    %c0_i32 = arith.constant 0 : i32
    %c0_i32_0 = arith.constant 0 : i32
    %c0_i32_1 = arith.constant 0 : i32
    return %arg0, %c0_i32, %c0_i32_0 : i32, i32, i32
  }
  func.func @transform_1(%arg0: i32) -> (i32, i32) {
    %c0_i32 = arith.constant 0 : i32
    %c0_i32_0 = arith.constant 0 : i32
    %c0_i32_1 = arith.constant 0 : i32
    return %c0_i32, %c0_i32_0 : i32, i32
  }
  func.func @transform_2(%arg0: i32) -> (i32, i32) {
    %c0_i32 = arith.constant 0 : i32
    %c0_i32_0 = arith.constant 0 : i32
    %c0_i32_1 = arith.constant 0 : i32
    return %c0_i32, %c0_i32_0 : i32, i32
  }
  func.func @transform_3(%arg0: i32) -> (i32, i32) {
    %c0_i32 = arith.constant 0 : i32
    %c0_i32_0 = arith.constant 0 : i32
    %c0_i32_1 = arith.constant 0 : i32
    return %c0_i32, %c0_i32_0 : i32, i32
  }
  func.func @transform_4(%arg0: i32) -> (i32, i32) {
    %c0_i32 = arith.constant 0 : i32
    %c0_i32_0 = arith.constant 0 : i32
    %c0_i32_1 = arith.constant 0 : i32
    return %c0_i32, %c0_i32_0 : i32, i32
  }
  func.func @transform_5(%arg0: i32) -> (i32, i32, i32) {
    %c0_i32 = arith.constant 0 : i32
    %c0_i32_0 = arith.constant 0 : i32
    %c0_i32_1 = arith.constant 0 : i32
    return %arg0, %c0_i32, %c0_i32_0 : i32, i32, i32
  }
}

</mosaic_0001>

<bundles_post_ra>
// kernel: tpu_custom_call.1
= control target key start
LH: loop header
LB: loop body
LE: loop exit
PB: predicated region body
PF: predicated region fallthrough
CT: control target
= control target key end

     0   :  { %10 = vsyncpa [#allocation3], 0  ;;  %s1502_s0 = inlined_call_operand.hbm [shape: f32[2,16,4096], index: 0, kind: input, shape index: {}]   ;;  %s1503_s1 = inlined_call_operand.vmem [shape: f32[8,16], index: 1, kind: input, shape index: {}]   ;;  %s1504_s2 = inlined_call_operand.vmem [shape: f32[8,1], index: 2, kind: input, shape index: {}]   ;;  %s1505_s3 = inlined_call_operand.vmem [shape: f32[16,8], index: 3, kind: input, shape index: {}]   ;;  %s1506_s4 = inlined_call_operand.vmem [shape: f32[16,1], index: 4, kind: input, shape index: {}]   ;;  %s1507_s5 = inlined_call_operand.hbm [shape: f32[2,16,4096], index: 5, kind: output, shape index: {}]  }
   0x1   :  { %12 = vsyncpa [#allocation3 + $0x1], 0 }
   0x2   :  { %13 = vsyncpa [#allocation4], 0 }
   0x3   :  { %15 = vsyncpa [#allocation4 + $0x1], 0  ;;  %s930_s18 = smov 0   ;;  %s932_s19 = smov 0  }
   0x4   :  { %s934_s20 = smov 0   ;;  %s936_s21 = smov 0  }
   0x5 LB: > { %s951_s22 = sadd.s32 4294967295, %s892_s21   ;;  %s710_s23 = sadd.s32 4294967294, %s892_s21   ;;  %s892_s21 = sphi %s936_s21, %s1574_s21   ;;  %s888_s20 = sphi %s934_s20, %s1573_s20   ;;  %s884_s19 = sphi %s932_s19, %s1572_s19   ;;  %s880_s18 = sphi %s930_s18, %s1571_s18  }
   0x6   : > { %s955_s24 = sadd.s32 1, %s892_s21   ;;  %s28_s25 = sadd.s32 1, %s888_s20 }
   0x7   : > { %s25_s26 = ssub.s32 %s892_s21, %s955_s24  ;;  %p35_p0 = scmp.ne.s32.totalorder %s888_s20, %s884_s19 }
   0x8   : > { %p26_p1 = scmp.eq.s32.totalorder %s25_s26, 0  ;;  %p36_p2 = scmp.eq.s32.totalorder %s892_s21, 0 }
   0x9   : > { %p41_p3 = scmp.ne.s32.totalorder %s884_s19, %s880_s18  ;;  %p42_p4 = scmp.eq.s32.totalorder %s951_s22, 0 }
   0xa   : > { %s967_s27 = scalar_select %p26_p1, %s888_s20, %s28_s25  }
   0xb   : > { %p969_p5 = por %p36_p2, %p35_p0  ;;  %p973_p6 = por %p42_p4, %p41_p3 }
   0xc   : > { %p149_p7 = scmp.eq.s32.totalorder %s951_s22, 1  ;;  %p155_p8 = scmp.eq.s32.totalorder %s710_s23, 1 }
   0xd   : > { %p744_p10 = scmp.lt.s32.totalorder %s892_s21, 2  ;;  %s187_s7 = sand.u32 1, %s888_s20  }
   0xe   : > { %p980_p11 = por %p149_p7, %p35_p0  ;;  %p984_p12 = por %p155_p8, %p41_p3 }
   0xf   : > { %s729_s8 = sshll.u32 %s892_s21, 9  ;;  %s713_s9 = sshll.u32 %s187_s7, 9 }
  0x10   : > { %s196_s12 = scalar_lea.hbm %s1502_s0, %s729_s8  ;;  %s191_s14 = scalar_lea.vmem [#allocation2], %s713_s9 }
  0x11   : > { %s197_s13 = sshll.u32 %s196_s12, 4  ;;  %s199_s15 = sshll.u32 %s191_s14, 4  ;;  %s198_s13 = int_to_ptr.hbm [resolvable:$true] %s197_s13  ;;  %s200_s15 = int_to_ptr.vmem [resolvable:$true] %s199_s15 }
  0x12   : > { %p995_p13 = pnand %p744_p10, %p969_p5  ;;  %p716_p0 = scmp.ge.s32.totalorder %s892_s21, 1 }
  0x13   : > { %p207_p1 = scmp.lt.s32.totalorder %s892_s21, 3  ;;  %s188_s17 = scalar_lea.sflag [#allocation3], %s187_s7 }
  0x14   : > { %s796_s23 = sshra.s32 %s198_s13, 4  ;;  %p800_p3 = pneg %p995_p13  ;;  %s797_s23 = int_to_ptr.hbm [resolvable:$true] %s796_s23 }
  0x15   : > { %s798_s25 = scalar_lea.hbm %s797_s23, 512  ;;  %s803_s28 = scalar_lea.hbm %s1502_s0, 1024 }
  0x16   : > { %p799_p2 = scmp.ne.s32.totalorder %s797_s23, %s798_s25  ;;  %p804_p5 = scmp.lt.s32.totalorder %s797_s23, %s1502_s0 }
  0x17   : > { %p805_p8 = scmp.lt.s32.totalorder %s803_s28, %s798_s25 }
  0x18   : > { %p801_p4 = pnand %p800_p3, %p799_p2 }
  0x19   : > { %p806_p10 = por %p805_p8, %p804_p5 }
  0x1a   : > { %p802_p7 = pneg %p801_p4 }
  0x1c   : > { %p807_p9 = pnand %p806_p10, %p802_p7 }
  0x1e   : > { %810 = shalt.err (!%p807_p9)
}
  0x1f   : > { %s894_s7 = smov 4096   ;;  %s895_s11 = smov 256  }
  0x20   : > { %739 = dma.hbm_to_vmem [thread:$0]  (!%p995_p13), %s198_s13, 8192, %s200_s15, %s188_s17, %s894_s7, %s894_s7, %s895_s11  }
  0x21   : > { %p208_p2 = pnand %p716_p0, %p207_p1 }
  0x23   : > { %211 = sbr.rel (%p208_p2) target bundleno = 705 (0x2c1), region = 40 }
  0x28   : > { %s1016_s12 = sand.u32 1, %s884_s19  }
  0x29   : > { %s717_s14 = sshll.u32 %s1016_s12, 9  ;;  %s214_s23 = scalar_lea.sflag [#allocation3], %s1016_s12 }
  0x2a   : > { %s1022_s25 = scalar_lea.vmem [#allocation2], %s717_s14 }
  0x2b   : > { %871 = dma.done.wait (%p973_p6), %s214_s23, 8192  }
  0x2c   : > { %873 = vsyncadd (%p973_p6), %s214_s23, 4294959104  ;;  %v1029_v0 = vld [vmem:[%s1022_s25 + $0x100] sm:$0xff]  ;;  %v1032_v1 = vld [vmem:[%s1022_s25 + $0x108] sm:$0xff]  ;;  %vm386_vm1 = vcmask 130048   ;;  %vm415_vm2 = vcmask 64512   ;;  %s1309_s23 = scalar_lea.vmem [#allocation5], %s717_s14 }
  0x2d   : > { %v1035_v2 = vld [vmem:[%s1022_s25 + $0x110] sm:$0xff]  ;;  %v342_v3 = vadd.f32 %v1032_v1, %v1029_v0  ;;  %v1040_v4 = vld [vmem:[%s1022_s25 + $0x118] sm:$0xff]  ;;  %v1044_v6 = vld [vmem:[%s1022_s25 + $0x120] sm:$0xff]  ;;  %s730_s14 = sshll.u32 %s951_s22, 9  ;;  %s634_s22 = sshll.u32 %s1309_s23, 4  ;;  %s635_s22 = int_to_ptr.vmem [resolvable:$true] %s634_s22 }
  0x2e   : > { %v1048_v8 = vld [vmem:[%s1022_s25 + $0x128] sm:$0xff]  ;;  %v1052_v10 = vld [vmem:[%s1022_s25 + $0x130] sm:$0xff]  ;;  %v1056_v12 = vld [vmem:[%s1022_s25 + $0x138] sm:$0xff]  ;;  %s633_s13 = scalar_lea.hbm %s1507_s5, %s730_s14  ;;  %s622_s16 = scalar_lea.sflag [#allocation4], %s1016_s12 }
  0x2f   : > { %v343_v5 = vadd.f32 %v342_v3, %v1035_v2  ;;  %v1059_v13 = vld [vmem:[%s1022_s25] sm:$0xff]  ;;  %v1063_v15 = vld [vmem:[%s1022_s25 + $0x8] sm:$0xff]  ;;  %v1066_v16 = vld [vmem:[%s1022_s25 + $0x10] sm:$0xff]  ;;  %s636_s15 = sshll.u32 %s633_s13, 4  ;;  %s846_s9 = scalar_lea.hbm %s1507_s5, 1024  ;;  %s637_s15 = int_to_ptr.hbm [resolvable:$true] %s636_s15 }
  0x30   : > { %v1069_v17 = vld [vmem:[%s1022_s25 + $0x140] sm:$0xff]  ;;  %v309_v18 = vadd.f32 %v1063_v15, %v1059_v13  ;;  %v1075_v20 = vld [vmem:[%s1022_s25 + $0x18] sm:$0xff]  ;;  %v1078_v21 = vld [vmem:[%s1022_s25 + $0x148] sm:$0xff]  ;;  %s840_s17 = sshra.s32 %s637_s15, 4  ;;  %s841_s17 = int_to_ptr.hbm [resolvable:$true] %s840_s17 }
  0x31   : > { %v344_v7 = vadd.f32 %v343_v5, %v1040_v4  ;;  %v1083_v24 = vld [vmem:[%s1022_s25 + $0x20] sm:$0xff]  ;;  %v1086_v25 = vld [vmem:[%s1022_s25 + $0x150] sm:$0xff]  ;;  %v1091_v28 = vld [vmem:[%s1022_s25 + $0x28] sm:$0xff]  ;;  %s842_s26 = scalar_lea.hbm %s841_s17, 512  ;;  %p847_p0 = scmp.lt.s32.totalorder %s841_s17, %s1507_s5 }
  0x32   : > { %v310_v22 = vadd.f32 %v309_v18, %v1066_v16  ;;  %v1094_v29 = vld [vmem:[%s1022_s25 + $0x158] sm:$0xff]  ;;  %v1099_v32 = vld [vmem:[%s1022_s25 + $0x30] sm:$0xff]  ;;  %v1102_v33 = vld [vmem:[%s1022_s25 + $0x160] sm:$0xff]  ;;  %p843_p6 = scmp.ne.s32.totalorder %s841_s17, %s842_s26  ;;  %p848_p1 = scmp.lt.s32.totalorder %s846_s9, %s842_s26 }
  0x33   : > { %v345_v9 = vadd.f32 %v344_v7, %v1044_v6  ;;  %v1107_v36 = vld [vmem:[%s1022_s25 + $0x38] sm:$0xff]  ;;  %v1110_v37 = vld [vmem:[%s1022_s25 + $0x168] sm:$0xff]  ;;  %v1115_v40 = vld [vmem:[%s1022_s25 + $0x40] sm:$0xff] }
  0x34   : > { %v311_v26 = vadd.f32 %v310_v22, %v1075_v20  ;;  %1532 = vst [vmem:[#allocation8_spill] sm:$0xff] %v1110_v37  ;;  %v1118_v41 = vld [vmem:[%s1022_s25 + $0x170] sm:$0xff]  ;;  %v1123_v44 = vld [vmem:[%s1022_s25 + $0x48] sm:$0xff]  ;;  %v1126_v45 = vld [vmem:[%s1022_s25 + $0x178] sm:$0xff]  ;;  %p844_p9 = pnand %p843_p6, %p980_p11  ;;  %p849_p3 = por %p848_p1, %p847_p0 }
  0x35   : > { %v346_v11 = vadd.f32 %v345_v9, %v1048_v8  ;;  %1533 = vst [vmem:[#allocation9_spill] sm:$0xff] %v1118_v41  ;;  %v1131_v48 = vld [vmem:[%s1022_s25 + $0x50] sm:$0xff]  ;;  %v1134_v49 = vld [vmem:[%s1022_s25 + $0x180] sm:$0xff]  ;;  %v1139_v52 = vld [vmem:[%s1022_s25 + $0x58] sm:$0xff] }
  0x36   : > { %v312_v30 = vadd.f32 %v311_v26, %v1083_v24  ;;  %1534 = vst [vmem:[#allocation10_spill] sm:$0xff] %v1126_v45  ;;  %v1142_v53 = vld [vmem:[%s1022_s25 + $0x188] sm:$0xff]  ;;  %v1147_v56 = vld [vmem:[%s1022_s25 + $0x60] sm:$0xff]  ;;  %v1150_v57 = vld [vmem:[%s1022_s25 + $0x190] sm:$0xff]  ;;  %p845_p13 = pneg %p844_p9 }
  0x37   : > { %v347_v14 = vadd.f32 %v346_v11, %v1052_v10  ;;  %1535 = vst [vmem:[#allocation11_spill] sm:$0xff] %v1134_v49  ;;  %v1155_v60 = vld [vmem:[%s1022_s25 + $0x68] sm:$0xff]  ;;  %v1158_v61 = vld [vmem:[%s1022_s25 + $0x198] sm:$0xff]  ;;  %v1163_v3 = vld [vmem:[%s1022_s25 + $0x70] sm:$0xff] }
  0x38   : > { %v313_v34 = vadd.f32 %v312_v30, %v1091_v28  ;;  %1536 = vst [vmem:[#allocation12_spill] sm:$0xff] %v1142_v53  ;;  %v1166_v5 = vld [vmem:[%s1022_s25 + $0x1a0] sm:$0xff]  ;;  %v1171_v11 = vld [vmem:[%s1022_s25 + $0x78] sm:$0xff]  ;;  %v1187_v30 = vld [vmem:[%s1022_s25 + $0x88] sm:$0xff]  ;;  %p850_p4 = pnand %p849_p3, %p845_p13 }
  0x39   : > { %v348_v19 = vadd.f32 %v347_v14, %v1056_v12  ;;  %1537 = vst [vmem:[#allocation13_spill] sm:$0xff] %v1150_v57  ;;  %v1174_v14 = vld [vmem:[%s1022_s25 + $0x1a8] sm:$0xff]  ;;  %v1179_v22 = vld [vmem:[%s1022_s25 + $0x80] sm:$0xff] }
  0x3a   : > { %v314_v38 = vadd.f32 %v313_v34, %v1099_v32  ;;  %1538 = vst [vmem:[#allocation14_spill] sm:$0xff] %v1158_v61 }
  0x3b   : > { %v349_v23 = vadd.f32 %v348_v19, %v1069_v17  ;;  %1539 = vst [vmem:[#allocation15_spill] sm:$0xff] %v1166_v5 }
  0x3c   : > { %v315_v42 = vadd.f32 %v314_v38, %v1107_v36  ;;  %1540 = vst [vmem:[#allocation16_spill] sm:$0xff] %v1174_v14  ;;  %v1195_v38 = vld [vmem:[%s1022_s25 + $0x90] sm:$0xff] }
  0x3d   : > { %v350_v27 = vadd.f32 %v349_v23, %v1078_v21  ;;  %v1182_v23 = vld [vmem:[%s1022_s25 + $0x1b0] sm:$0xff] }
  0x3e   : > { %v316_v46 = vadd.f32 %v315_v42, %v1115_v40  ;;  %1541 = vst [vmem:[#allocation17_spill] sm:$0xff] %v1182_v23 }
  0x3f   : > { %v351_v31 = vadd.f32 %v350_v27, %v1086_v25 }
  0x40   : > { %v317_v50 = vadd.f32 %v316_v46, %v1123_v44  ;;  %v1203_v46 = vld [vmem:[%s1022_s25 + $0x98] sm:$0xff] }
  0x41   : > { %v352_v35 = vadd.f32 %v351_v31, %v1094_v29  ;;  %v1190_v31 = vld [vmem:[%s1022_s25 + $0x1b8] sm:$0xff] }
  0x42   : > { %v318_v54 = vadd.f32 %v317_v50, %v1131_v48  ;;  %1542 = vst [vmem:[#allocation18_spill] sm:$0xff] %v1190_v31 }
  0x43   : > { %v353_v39 = vadd.f32 %v352_v35, %v1102_v33 }
  0x44   : > { %v319_v58 = vadd.f32 %v318_v54, %v1139_v52  ;;  %v1211_v54 = vld [vmem:[%s1022_s25 + $0xa0] sm:$0xff] }
  0x45   : > { %v354_v43 = vadd.f32 %v353_v39, %v1110_v37  ;;  %v1198_v39 = vld [vmem:[%s1022_s25 + $0x1c0] sm:$0xff] }
  0x46   : > { %v320_v62 = vadd.f32 %v319_v58, %v1147_v56  ;;  %1543 = vst [vmem:[#allocation19_spill] sm:$0xff] %v1198_v39 }
  0x47   : > { %v355_v47 = vadd.f32 %v354_v43, %v1118_v41 }
  0x48   : > { %v321_v7 = vadd.f32 %v320_v62, %v1155_v60  ;;  %v1219_v62 = vld [vmem:[%s1022_s25 + $0xa8] sm:$0xff] }
  0x49   : > { %v356_v51 = vadd.f32 %v355_v47, %v1126_v45  ;;  %v1206_v47 = vld [vmem:[%s1022_s25 + $0x1c8] sm:$0xff] }
  0x4a   : > { %v322_v18 = vadd.f32 %v321_v7, %v1163_v3  ;;  %1544 = vst [vmem:[#allocation20_spill] sm:$0xff] %v1206_v47 }
  0x4b   : > { %v357_v55 = vadd.f32 %v356_v51, %v1134_v49 }
  0x4c   : > { %v323_v26 = vadd.f32 %v322_v18, %v1171_v11  ;;  %v1227_v18 = vld [vmem:[%s1022_s25 + $0xb0] sm:$0xff] }
  0x4d   : > { %v358_v59 = vadd.f32 %v357_v55, %v1142_v53  ;;  %v1214_v55 = vld [vmem:[%s1022_s25 + $0x1d0] sm:$0xff] }
  0x4e   : > { %v324_v34 = vadd.f32 %v323_v26, %v1179_v22  ;;  %1545 = vst [vmem:[#allocation21_spill] sm:$0xff] %v1214_v55 }
  0x4f   : > { %v359_v63 = vadd.f32 %v358_v59, %v1150_v57 }
  0x50   : > { %v325_v42 = vadd.f32 %v324_v34, %v1187_v30  ;;  %v1235_v34 = vld [vmem:[%s1022_s25 + $0xb8] sm:$0xff] }
  0x51   : > { %v360_v9 = vadd.f32 %v359_v63, %v1158_v61  ;;  %v1222_v63 = vld [vmem:[%s1022_s25 + $0x1d8] sm:$0xff] }
  0x52   : > { %v326_v50 = vadd.f32 %v325_v42, %v1195_v38  ;;  %1546 = vst [vmem:[#allocation22_spill] sm:$0xff] %v1222_v63 }
  0x53   : > { %v361_v19 = vadd.f32 %v360_v9, %v1166_v5 }
  0x54   : > { %v327_v58 = vadd.f32 %v326_v50, %v1203_v46  ;;  %v1243_v50 = vld [vmem:[%s1022_s25 + $0xc0] sm:$0xff] }
  0x55   : > { %v362_v27 = vadd.f32 %v361_v19, %v1174_v14  ;;  %v1230_v19 = vld [vmem:[%s1022_s25 + $0x1e0] sm:$0xff] }
  0x56   : > { %v328_v7 = vadd.f32 %v327_v58, %v1211_v54  ;;  %1547 = vst [vmem:[#allocation23_spill] sm:$0xff] %v1230_v19 }
  0x57   : > { %v363_v35 = vadd.f32 %v362_v27, %v1182_v23 }
  0x58   : > { %v329_v26 = vadd.f32 %v328_v7, %v1219_v62  ;;  %v1251_v7 = vld [vmem:[%s1022_s25 + $0xc8] sm:$0xff] }
  0x59   : > { %v364_v43 = vadd.f32 %v363_v35, %v1190_v31  ;;  %v1238_v35 = vld [vmem:[%s1022_s25 + $0x1e8] sm:$0xff] }
  0x5a   : > { %1548 = vst [vmem:[#allocation24_spill] sm:$0xff] %v1238_v35  ;;  %v330_v42 = vadd.f32 %v329_v26, %v1227_v18 }
  0x5b   : > { %v365_v51 = vadd.f32 %v364_v43, %v1198_v39  ;;  %v1272_v39 = vld [vmem:[%s1022_s25 + $0xe8] sm:$0xff] }
  0x5c   : > { %v331_v58 = vadd.f32 %v330_v42, %v1235_v34 }
  0x5d   : > { %v366_v59 = vadd.f32 %v365_v51, %v1206_v47  ;;  %v1246_v51 = vld [vmem:[%s1022_s25 + $0x1f0] sm:$0xff]  ;;  %v1264_v47 = vld [vmem:[%s1022_s25 + $0xd8] sm:$0xff] }
  0x5e   : > { %1549 = vst [vmem:[#allocation25_spill] sm:$0xff] %v1246_v51  ;;  %v332_v26 = vadd.f32 %v331_v58, %v1243_v50 }
  0x5f   : > { %v367_v9 = vadd.f32 %v366_v59, %v1214_v55 }
  0x61   : > { %v368_v27 = vadd.f32 %v367_v9, %v1222_v63  ;;  %v1254_v9 = vld [vmem:[%s1022_s25 + $0x1f8] sm:$0xff] }
  0x62   : > { %1550 = vst [vmem:[#allocation26_spill] sm:$0xff] %v1254_v9 }
  0x63   : > { %v369_v43 = vadd.f32 %v368_v27, %v1230_v19  ;;  %v1259_v27 = vld [vmem:[%s1022_s25 + $0xd0] sm:$0xff]  ;;  %v333_v19 = vadd.f32 %v332_v26, %v1251_v7  ;;  %v1280_v26 = vld [vmem:[%s1022_s25 + $0xf8] sm:$0xff] }
  0x65   : > { %v370_v59 = vadd.f32 %v369_v43, %v1238_v35  ;;  %v334_v42 = vadd.f32 %v333_v19, %v1259_v27  ;;  %v1268_v43 = vld [vmem:[%s1022_s25 + $0xe0] sm:$0xff] }
  0x67   : > { %v371_v63 = vadd.f32 %v370_v59, %v1246_v51  ;;  %v335_v35 = vadd.f32 %v334_v42, %v1264_v47  ;;  %v1276_v59 = vld [vmem:[%s1022_s25 + $0xf0] sm:$0xff] }
  0x69   : > { %v372_v55 = vadd.f32 %v371_v63, %v1254_v9  ;;  %v336_v58 = vadd.f32 %v335_v35, %v1268_v43 }
  0x6b   : > { %373 = vadd.xlane.f32.xlu0 %v372_v55  ;;  %v337_v51 = vadd.f32 %v336_v58, %v1272_v39  ;;  %v896_v55 = vmov 4096.0  }
  0x6c   : > { %786 = vrcp.f32 %v896_v55 }
  0x6d   : > { %v338_v63 = vadd.f32 %v337_v51, %v1276_v59  ;;  %v384_v51 = vld [vmem:[%s1503_s1] sm:$0xff] }
  0x6f   : > { %v339_v9 = vadd.f32 %v338_v63, %v1280_v26 }
  0x72   : > { %v787_v19 = vpop.eup %786 }
  0x73   : > { %340 = vadd.xlane.f32.xlu0 %v339_v9  ;;  %v376_v31 = vmul.f32 4096.0, %v787_v19  ;;  %vm380_vm0 = vweird.f32 %v787_v19 }
  0x75   : > { %v377_v42 = vsub.f32 1.0, %v376_v31  ;;  %v385_v31 = vld [vmem:[%s1504_s2] sm:$0xff] }
  0x77   : > { %v378_v23 = vmul.f32 %v787_v19, %v377_v42 }
  0x79   : > { %v379_v14 = vadd.f32 %v787_v19, %v378_v23 }
  0x7b   : > { %v381_v35 = vsel %vm380_vm0, %v787_v19, %v379_v14  ;;  %v413_v14 = vld [vmem:[%s1506_s4] sm:$0xff] }
  0xde   : > { %v374_v5 = vpop.xlane.xlu0 %373 }
  0xdf   : > { %v383_v61 = vmul.f32 %v381_v35, %v374_v5  ;;  %v412_v5 = vld [vmem:[%s1505_s3 + $0x8] sm:$0xff] }
  0xe1   : > { %404 = vmatpush.msra.mxu0 %v383_v61  ;;  %v411_v61 = vld [vmem:[%s1505_s3] sm:$0xff] }
  0xe6   : > { %v341_v58 = vpop.xlane.xlu0 %340 }
  0xe7   : > { %v382_v57 = vmul.f32 %v381_v35, %v341_v58  ;;  %v414_v35 = vld [vmem:[%s1506_s4 + $0x8] sm:$0xff] }
  0xe9   : > { %405 = vmatpush.msra.mxu0 %v382_v57  ;;  %v897_v57 = vmov 0  }
  0xea   : > { %719 = vmatmul.msk.f32.vlgmr.msra.gmra.mxu0 %vm386_vm1, %v384_v51  ;;  %784 = vset.pattern.permute.xlu1 %v897_v57 }
  0xeb   : > { %785 = vset.pattern.permute.xlu0 %v897_v57 }
 0x167   : > { %v407_v9 = vpop.f32.mrf.mxu0 }
 0x168   : > { %v408_v23 = vadd.f32 %v407_v9, %v385_v31 }
 0x16a   : > { %v410_v63 = vmax.f32 %v408_v23, 0.0 }
 0x16c   : > { %437 = vmatpush.msra.mxu1 %v410_v63  ;;  %731 = vmatpush.msra.mxu2 %v410_v63 }
 0x16d   : > { %720 = vmatmul.msk.f32.vlgmr.msra.gmra.mxu1 %vm415_vm2, %v411_v61  ;;  %721 = vmatmul.msk.f32.vlgmr.msra.gmra.mxu2 %vm415_vm2, %v412_v5 }
 0x1ea   : > { %v439_v55 = vpop.f32.mrf.mxu1 }
 0x1eb   : > { %v440_v19 = vadd.f32 %v439_v55, %v413_v14 }
 0x1ed   : > { %v722_v42 = vmul.f32 -1.442695, %v440_v19 }
 0x1ef   : > { %788 = vpow2.f32 %v722_v42 }
 0x1f0   : > { %v442_v58 = vpop.f32.mrf.mxu2 }
 0x1f1   : > { %v443_v51 = vadd.f32 %v442_v58, %v414_v35 }
 0x1f3   : > { %v723_v31 = vmul.f32 -1.442695, %v443_v51 }
 0x1f5   : > { %v789_v9 = vpop.eup %788  ;;  %790 = vpow2.f32 %v723_v31 }
 0x1f6   : > { %v451_v23 = vadd.f32 1.0, %v789_v9 }
 0x1f8   : > { %792 = vrcp.f32 %v451_v23  ;;  %v464_v14 = vand.u32 2147483648, %v451_v23  ;;  %v462_v19 = vand.u32 2147483647, %v451_v23  ;;  %vm458_vm4 = vweird.f32 %v451_v23 }
 0x1fa   : > { %v465_v35 = vor.u32 1.1754944e-38, %v464_v14  ;;  %vm463_vm6 = vcmp.eq.f32.partialorder %v462_v19, 8.507059e+37 }
 0x1fb   : > { %v791_v63 = vpop.eup %790 }
 0x1fc   : > { %v452_v61 = vadd.f32 1.0, %v791_v63 }
 0x1fe   : > { %v793_v5 = vpop.eup %792  ;;  %794 = vrcp.f32 %v452_v61  ;;  %v479_v63 = vand.u32 2147483648, %v452_v61  ;;  %vm473_vm8 = vweird.f32 %v452_v61 }
 0x1ff   : > { %v454_v57 = vmul.f32 %v793_v5, %v451_v23  ;;  %vm459_vm3 = vweird.f32 %v793_v5 }
 0x200   : > { %vm460_vm5 = vmor %vm458_vm4, %vm459_vm3  ;;  %v480_v37 = vor.u32 1.1754944e-38, %v479_v63 }
 0x201   : > { %v455_v53 = vsub.f32 1.0, %v454_v57 }
 0x203   : > { %v456_v55 = vmul.f32 %v793_v5, %v455_v53  ;;  %v477_v53 = vand.u32 2147483647, %v452_v61 }
 0x204   : > { %v795_v49 = vpop.eup %794 }
 0x205   : > { %v457_v45 = vadd.f32 %v793_v5, %v456_v55  ;;  %v469_v42 = vmul.f32 %v795_v49, %v452_v61  ;;  %vm474_vm7 = vweird.f32 %v795_v49  ;;  %vm478_vm10 = vcmp.eq.f32.partialorder %v477_v53, 8.507059e+37  ;;  %v1554_v61 = vld [vmem:[#allocation11_spill] sm:$0xff] }
 0x206   : > { %vm475_vm9 = vmor %vm473_vm8, %vm474_vm7 }
 0x207   : > { %v461_v58 = vsel %vm460_vm5, %v793_v5, %v457_v45  ;;  %v470_v51 = vsub.f32 1.0, %v469_v42 }
 0x208   : > { %v466_v31 = vsel %vm463_vm6, %v465_v35, %v461_v58  ;;  %v1555_v35 = vld [vmem:[#allocation12_spill] sm:$0xff] }
 0x209   : > { %485 = vperm.xlu1 %784, %v466_v31   ;;  %v471_v9 = vmul.f32 %v795_v49, %v470_v51  ;;  %v1556_v51 = vld [vmem:[#allocation13_spill] sm:$0xff] }
 0x20b   : > { %v472_v57 = vadd.f32 %v795_v49, %v471_v9  ;;  %v1557_v9 = vld [vmem:[#allocation14_spill] sm:$0xff] }
 0x20d   : > { %v476_v41 = vsel %vm475_vm9, %v795_v49, %v472_v57  ;;  %v1558_v57 = vld [vmem:[#allocation15_spill] sm:$0xff] }
 0x20e   : > { %v481_v23 = vsel %vm478_vm10, %v480_v37, %v476_v41 }
 0x211   : > { %490 = vperm.xlu1 %784, %v481_v23   ;;  %v1559_v23 = vld [vmem:[#allocation16_spill] sm:$0xff] }
 0x27b   : > { %v486_v55 = vpop.permute.xlu1 %485 }
 0x27c   : > { %v493_v45 = vmul.f32 %v486_v55, %v1059_v13  ;;  %v494_v5 = vmul.f32 %v486_v55, %v1063_v15  ;;  %v495_v14 = vmul.f32 %v486_v55, %v1066_v16  ;;  %v496_v19 = vmul.f32 %v486_v55, %v1075_v20 }
 0x27d   : > { %v497_v42 = vmul.f32 %v486_v55, %v1083_v24  ;;  %v498_v13 = vmul.f32 %v486_v55, %v1091_v28  ;;  %v499_v15 = vmul.f32 %v486_v55, %v1099_v32  ;;  %v500_v16 = vmul.f32 %v486_v55, %v1107_v36 }
 0x27e   : > { %557 = vst [vmem:[%s1309_s23] sm:$0xff] %v493_v45  ;;  %v501_v20 = vmul.f32 %v486_v55, %v1115_v40  ;;  %v502_v24 = vmul.f32 %v486_v55, %v1123_v44  ;;  %v503_v28 = vmul.f32 %v486_v55, %v1131_v48  ;;  %v504_v32 = vmul.f32 %v486_v55, %v1139_v52  ;;  %v1560_v45 = vld [vmem:[#allocation17_spill] sm:$0xff] }
 0x27f   : > { %558 = vst [vmem:[%s1309_s23 + $0x8] sm:$0xff] %v494_v5  ;;  %v505_v36 = vmul.f32 %v486_v55, %v1147_v56  ;;  %v506_v37 = vmul.f32 %v486_v55, %v1155_v60  ;;  %v507_v40 = vmul.f32 %v486_v55, %v1163_v3  ;;  %v508_v41 = vmul.f32 %v486_v55, %v1171_v11 }
 0x280   : > { %559 = vst [vmem:[%s1309_s23 + $0x10] sm:$0xff] %v495_v14  ;;  %v509_v44 = vmul.f32 %v486_v55, %v1179_v22  ;;  %v510_v48 = vmul.f32 %v486_v55, %v1187_v30  ;;  %v511_v49 = vmul.f32 %v486_v55, %v1195_v38  ;;  %v512_v52 = vmul.f32 %v486_v55, %v1203_v46  ;;  %v1561_v14 = vld [vmem:[#allocation18_spill] sm:$0xff] }
 0x281   : > { %560 = vst [vmem:[%s1309_s23 + $0x18] sm:$0xff] %v496_v19  ;;  %v513_v56 = vmul.f32 %v486_v55, %v1211_v54  ;;  %v514_v60 = vmul.f32 %v486_v55, %v1219_v62  ;;  %v515_v3 = vmul.f32 %v486_v55, %v1227_v18  ;;  %v516_v11 = vmul.f32 %v486_v55, %v1235_v34 }
 0x282   : > { %561 = vst [vmem:[%s1309_s23 + $0x20] sm:$0xff] %v497_v42  ;;  %v517_v22 = vmul.f32 %v486_v55, %v1243_v50  ;;  %v518_v30 = vmul.f32 %v486_v55, %v1251_v7  ;;  %v519_v38 = vmul.f32 %v486_v55, %v1259_v27  ;;  %v520_v46 = vmul.f32 %v486_v55, %v1264_v47  ;;  %v1562_v42 = vld [vmem:[#allocation19_spill] sm:$0xff] }
 0x283   : > { %562 = vst [vmem:[%s1309_s23 + $0x28] sm:$0xff] %v498_v13  ;;  %v521_v54 = vmul.f32 %v486_v55, %v1268_v43  ;;  %v522_v62 = vmul.f32 %v486_v55, %v1272_v39  ;;  %v1362_v18 = vpop.permute.xlu1 %490  ;;  %v523_v34 = vmul.f32 %v486_v55, %v1276_v59  ;;  %v524_v50 = vmul.f32 %v486_v55, %v1280_v26  ;;  %v1552_v59 = vld [vmem:[#allocation9_spill] sm:$0xff]  ;;  %v1553_v26 = vld [vmem:[#allocation10_spill] sm:$0xff] }
 0x284   : > { %563 = vst [vmem:[%s1309_s23 + $0x30] sm:$0xff] %v499_v15  ;;  %v525_v47 = vmul.f32 %v1362_v18, %v1029_v0  ;;  %v526_v39 = vmul.f32 %v1362_v18, %v1032_v1  ;;  %v527_v7 = vmul.f32 %v1362_v18, %v1035_v2  ;;  %v528_v27 = vmul.f32 %v1362_v18, %v1040_v4  ;;  %v1563_v15 = vld [vmem:[#allocation20_spill] sm:$0xff] }
 0x285   : > { %564 = vst [vmem:[%s1309_s23 + $0x38] sm:$0xff] %v500_v16  ;;  %v529_v43 = vmul.f32 %v1362_v18, %v1044_v6  ;;  %v530_v0 = vmul.f32 %v1362_v18, %v1048_v8  ;;  %v531_v1 = vmul.f32 %v1362_v18, %v1052_v10  ;;  %v532_v2 = vmul.f32 %v1362_v18, %v1056_v12 }
 0x286   : > { %565 = vst [vmem:[%s1309_s23 + $0x40] sm:$0xff] %v501_v20  ;;  %v533_v4 = vmul.f32 %v1362_v18, %v1069_v17  ;;  %v534_v6 = vmul.f32 %v1362_v18, %v1078_v21  ;;  %v535_v8 = vmul.f32 %v1362_v18, %v1086_v25  ;;  %v536_v10 = vmul.f32 %v1362_v18, %v1094_v29  ;;  %v1551_v17 = vld [vmem:[#allocation8_spill] sm:$0xff]  ;;  %v1564_v20 = vld [vmem:[#allocation21_spill] sm:$0xff] }
 0x287   : > { %566 = vst [vmem:[%s1309_s23 + $0x48] sm:$0xff] %v502_v24  ;;  %v537_v12 = vmul.f32 %v1362_v18, %v1102_v33  ;;  %v538_v21 = vmul.f32 %v1362_v18, %v1551_v17  ;;  %v539_v25 = vmul.f32 %v1362_v18, %v1552_v59  ;;  %v540_v29 = vmul.f32 %v1362_v18, %v1553_v26 }
 0x288   : > { %567 = vst [vmem:[%s1309_s23 + $0x50] sm:$0xff] %v503_v28  ;;  %v541_v33 = vmul.f32 %v1362_v18, %v1554_v61  ;;  %v542_v58 = vmul.f32 %v1362_v18, %v1555_v35  ;;  %v543_v31 = vmul.f32 %v1362_v18, %v1556_v51  ;;  %v544_v63 = vmul.f32 %v1362_v18, %v1557_v9  ;;  %v1565_v28 = vld [vmem:[#allocation22_spill] sm:$0xff] }
 0x289   : > { %568 = vst [vmem:[%s1309_s23 + $0x58] sm:$0xff] %v504_v32  ;;  %v545_v53 = vmul.f32 %v1362_v18, %v1558_v57  ;;  %v546_v55 = vmul.f32 %v1362_v18, %v1559_v23  ;;  %v547_v5 = vmul.f32 %v1362_v18, %v1560_v45  ;;  %v548_v19 = vmul.f32 %v1362_v18, %v1561_v14 }
 0x28a   : > { %569 = vst [vmem:[%s1309_s23 + $0x60] sm:$0xff] %v505_v36  ;;  %v549_v13 = vmul.f32 %v1362_v18, %v1562_v42  ;;  %v550_v16 = vmul.f32 %v1362_v18, %v1563_v15  ;;  %v551_v24 = vmul.f32 %v1362_v18, %v1564_v20  ;;  %v552_v32 = vmul.f32 %v1362_v18, %v1565_v28  ;;  %v1566_v36 = vld [vmem:[#allocation23_spill] sm:$0xff] }
 0x28b   : > { %570 = vst [vmem:[%s1309_s23 + $0x68] sm:$0xff] %v506_v37  ;;  %v553_v37 = vmul.f32 %v1362_v18, %v1566_v36 }
 0x28c   : > { %571 = vst [vmem:[%s1309_s23 + $0x70] sm:$0xff] %v507_v40  ;;  %v1567_v40 = vld [vmem:[#allocation24_spill] sm:$0xff] }
 0x28d   : > { %572 = vst [vmem:[%s1309_s23 + $0x78] sm:$0xff] %v508_v41  ;;  %v554_v41 = vmul.f32 %v1362_v18, %v1567_v40 }
 0x28e   : > { %573 = vst [vmem:[%s1309_s23 + $0x80] sm:$0xff] %v509_v44  ;;  %v1568_v44 = vld [vmem:[#allocation25_spill] sm:$0xff] }
 0x28f   : > { %574 = vst [vmem:[%s1309_s23 + $0x88] sm:$0xff] %v510_v48  ;;  %v555_v48 = vmul.f32 %v1362_v18, %v1568_v44 }
 0x290   : > { %575 = vst [vmem:[%s1309_s23 + $0x90] sm:$0xff] %v511_v49  ;;  %v1569_v49 = vld [vmem:[#allocation26_spill] sm:$0xff] }
 0x291   : > { %576 = vst [vmem:[%s1309_s23 + $0x98] sm:$0xff] %v512_v52  ;;  %v556_v52 = vmul.f32 %v1362_v18, %v1569_v49 }
 0x292   : > { %577 = vst [vmem:[%s1309_s23 + $0xa0] sm:$0xff] %v513_v56 }
 0x293   : > { %578 = vst [vmem:[%s1309_s23 + $0xa8] sm:$0xff] %v514_v60 }
 0x294   : > { %579 = vst [vmem:[%s1309_s23 + $0xb0] sm:$0xff] %v515_v3 }
 0x295   : > { %580 = vst [vmem:[%s1309_s23 + $0xb8] sm:$0xff] %v516_v11 }
 0x296   : > { %581 = vst [vmem:[%s1309_s23 + $0xc0] sm:$0xff] %v517_v22 }
 0x297   : > { %582 = vst [vmem:[%s1309_s23 + $0xc8] sm:$0xff] %v518_v30 }
 0x298   : > { %583 = vst [vmem:[%s1309_s23 + $0xd0] sm:$0xff] %v519_v38 }
 0x299   : > { %584 = vst [vmem:[%s1309_s23 + $0xd8] sm:$0xff] %v520_v46 }
 0x29a   : > { %585 = vst [vmem:[%s1309_s23 + $0xe0] sm:$0xff] %v521_v54 }
 0x29b   : > { %586 = vst [vmem:[%s1309_s23 + $0xe8] sm:$0xff] %v522_v62 }
 0x29c   : > { %587 = vst [vmem:[%s1309_s23 + $0xf0] sm:$0xff] %v523_v34 }
 0x29d   : > { %588 = vst [vmem:[%s1309_s23 + $0xf8] sm:$0xff] %v524_v50 }
 0x29e   : > { %589 = vst [vmem:[%s1309_s23 + $0x100] sm:$0xff] %v525_v47 }
 0x29f   : > { %590 = vst [vmem:[%s1309_s23 + $0x108] sm:$0xff] %v526_v39 }
 0x2a0   : > { %591 = vst [vmem:[%s1309_s23 + $0x110] sm:$0xff] %v527_v7 }
 0x2a1   : > { %592 = vst [vmem:[%s1309_s23 + $0x118] sm:$0xff] %v528_v27 }
 0x2a2   : > { %593 = vst [vmem:[%s1309_s23 + $0x120] sm:$0xff] %v529_v43 }
 0x2a3   : > { %594 = vst [vmem:[%s1309_s23 + $0x128] sm:$0xff] %v530_v0 }
 0x2a4   : > { %595 = vst [vmem:[%s1309_s23 + $0x130] sm:$0xff] %v531_v1 }
 0x2a5   : > { %596 = vst [vmem:[%s1309_s23 + $0x138] sm:$0xff] %v532_v2 }
 0x2a6   : > { %597 = vst [vmem:[%s1309_s23 + $0x140] sm:$0xff] %v533_v4 }
 0x2a7   : > { %598 = vst [vmem:[%s1309_s23 + $0x148] sm:$0xff] %v534_v6 }
 0x2a8   : > { %599 = vst [vmem:[%s1309_s23 + $0x150] sm:$0xff] %v535_v8 }
 0x2a9   : > { %600 = vst [vmem:[%s1309_s23 + $0x158] sm:$0xff] %v536_v10 }
 0x2aa   : > { %601 = vst [vmem:[%s1309_s23 + $0x160] sm:$0xff] %v537_v12 }
 0x2ab   : > { %602 = vst [vmem:[%s1309_s23 + $0x168] sm:$0xff] %v538_v21 }
 0x2ac   : > { %603 = vst [vmem:[%s1309_s23 + $0x170] sm:$0xff] %v539_v25 }
 0x2ad   : > { %604 = vst [vmem:[%s1309_s23 + $0x178] sm:$0xff] %v540_v29 }
 0x2ae   : > { %605 = vst [vmem:[%s1309_s23 + $0x180] sm:$0xff] %v541_v33 }
 0x2af   : > { %606 = vst [vmem:[%s1309_s23 + $0x188] sm:$0xff] %v542_v58 }
 0x2b0   : > { %607 = vst [vmem:[%s1309_s23 + $0x190] sm:$0xff] %v543_v31 }
 0x2b1   : > { %608 = vst [vmem:[%s1309_s23 + $0x198] sm:$0xff] %v544_v63 }
 0x2b2   : > { %609 = vst [vmem:[%s1309_s23 + $0x1a0] sm:$0xff] %v545_v53 }
 0x2b3   : > { %610 = vst [vmem:[%s1309_s23 + $0x1a8] sm:$0xff] %v546_v55 }
 0x2b4   : > { %611 = vst [vmem:[%s1309_s23 + $0x1b0] sm:$0xff] %v547_v5 }
 0x2b5   : > { %612 = vst [vmem:[%s1309_s23 + $0x1b8] sm:$0xff] %v548_v19 }
 0x2b6   : > { %613 = vst [vmem:[%s1309_s23 + $0x1c0] sm:$0xff] %v549_v13 }
 0x2b7   : > { %614 = vst [vmem:[%s1309_s23 + $0x1c8] sm:$0xff] %v550_v16 }
 0x2b8   : > { %615 = vst [vmem:[%s1309_s23 + $0x1d0] sm:$0xff] %v551_v24 }
 0x2b9   : > { %616 = vst [vmem:[%s1309_s23 + $0x1d8] sm:$0xff] %v552_v32 }
 0x2ba   : > { %617 = vst [vmem:[%s1309_s23 + $0x1e0] sm:$0xff] %v553_v37 }
 0x2bb   : > { %618 = vst [vmem:[%s1309_s23 + $0x1e8] sm:$0xff] %v554_v41 }
 0x2bc   : > { %619 = vst [vmem:[%s1309_s23 + $0x1f0] sm:$0xff] %v555_v48 }
 0x2bd   : > { %620 = vst [vmem:[%s1309_s23 + $0x1f8] sm:$0xff] %v556_v52 }
 0x2be   : > { %853 = shalt.err (!%p850_p4)
}
 0x2bf   : > { %s898_s12 = smov 4096   ;;  %s899_s11 = smov 256  }
 0x2c0   : > { %734 = dma.vmem_to_hbm [thread:$0]  (%p980_p11), %s635_s22, 8192, %s637_s15, %s622_s16, %s898_s12, %s898_s12, %s899_s11  }
 0x2c1 PF: > { %s651_s23 = sand.u32 1, %s880_s18   ;;  %p1570_p7 = scmp.ge.s32.totalorder %s892_s21, 2 }
 0x2c2   : > { %s652_s14 = scalar_lea.sflag [#allocation4], %s651_s23 }
 0x2c3   : > { %p741_p5 = pnand %p1570_p7, %p984_p12 }
 0x2c5   : > { %p742_p8 = pneg %p741_p5 }
 0x2c7   : > { %875 = dma.done.wait (%p742_p8), %s652_s14, 8192  }
 0x2c8   : > { %877 = vsyncadd (%p742_p8), %s652_s14, 4294959104  ;;  %p18_p10 = scmp.ge.s32.totalorder %s955_s24, 4   ;;  %s1571_s18 = smov %s884_s19 }
 0x2c9   : > { %s1572_s19 = smov %s888_s20  ;;  %s1573_s20 = smov %s967_s27 }
 0x2ca   : > { %s1574_s21 = smov %s955_s24  ;;  %20 = sbr.rel (!%p18_p10) target bundleno = 5 (0x5), region = 85 }
 0x2cf   :  { %658 = vsyncpa [#allocation3], 1 }
 0x2d0   :  { %660 = vsyncpa [#allocation3 + $0x1], 1 }
 0x2d1   :  { %661 = vsyncpa [#allocation4], 1 }
 0x2d2   :  { %663 = vsyncpa [#allocation4 + $0x1], 1 }

</bundles_post_ra>
